<compile_context>
chip_gen: v6e
topology: v6e:2x2x1
jax: 0.10.0
libtpu: 0.0.40
codegen_flags: <defaults>
</compile_context>

<pallas_src>
import functools

import jax
import jax.numpy as jnp
from jax.experimental import pallas as pl
from jax.experimental.pallas import tpu as pltpu

IN_F = 784
H1 = 128
H2_RAW = 64
H2_PAD = 128      # fc3 output padded to a lane-dense width
OUT_RAW = 10
OUT_PAD = 128     # fc4 output padded to a lane-dense width (real logits: cols 0..9)
NEG_BIAS = -1e30  # padded fc4 columns: effectively -inf, drop out of max/logsumexp


def _round_up(n, m):
    return ((n + m - 1) // m) * m


def mlp_kernel(x_ref, w1_ref, b1_ref, w2_ref, b2_ref, w3_ref, b3_ref, o_ref):
    # x arrives as f32 straight from HBM; cast to bf16 here (VPU, hidden under
    # the tile DMA) so the wrapper never does a separate convert pass over x.
    x = x_ref[...].astype(jnp.bfloat16)                        # (TB, 784)

    # fc1 + ReLU  (dropout == identity at inference)
    h1 = jnp.dot(x, w1_ref[...], preferred_element_type=jnp.float32) + b1_ref[...]
    h1 = jnp.maximum(h1, 0.0).astype(jnp.bfloat16)             # (TB, 128)

    # fc3 + ReLU (output padded 64 -> 128 zero columns; padded cols stay 0)
    h2 = jnp.dot(h1, w2_ref[...], preferred_element_type=jnp.float32) + b2_ref[...]
    h2 = jnp.maximum(h2, 0.0).astype(jnp.bfloat16)             # (TB, 128)

    # fc4 (padded to 128 lanes; padded columns have zero weights and -1e30 bias)
    logits = jnp.dot(h2, w3_ref[...], preferred_element_type=jnp.float32) + b3_ref[...]

    # log_softmax over dim=1 (numerically stable shifted form).
    #  - row max: XLU
    #  - exp:     EUP
    #  - row sum: MXU matvec against a ones column (keeps the XLU from becoming
    #    the binding slot on v7x; neutral on DMA-bound v5e/v6e)
    m = jnp.max(logits, axis=-1, keepdims=True)
    shifted = logits - m
    p = jnp.exp(shifted)
    ones_col = jnp.ones((OUT_PAD, 1), jnp.float32)
    lse = jnp.log(jnp.dot(p, ones_col, preferred_element_type=jnp.float32))
    o_ref[...] = (shifted - lse).astype(o_ref.dtype)           # bf16 lane-dense store


def prepare_params(params):
    """One-time preprocessing of raw (in, out) f32 params into kernel form.

    Pads fc3/fc4 to lane-dense widths and casts weights to bf16.  Run once
    (e.g. at load time); feed the result to network_forward on every call so
    no per-call XLA padding/cast ops are emitted.
    """
    w1, b1, w2, b2, w3, b3 = params
    # fc3: pad outputs 64 -> 128 with zeros (h2 padded columns become ReLU(0)=0).
    w2p = jnp.pad(w2, ((0, 0), (0, H2_PAD - w2.shape[1])))
    b2p = jnp.pad(b2, ((0, 0), (0, H2_PAD - b2.shape[1])))
    # fc4: pad inputs 64 -> 128 with zero rows (matching h2's zero columns) and
    # outputs 10 -> 128 with zero weights / -1e30 bias.
    w3p = jnp.pad(w3, ((0, H2_PAD - w3.shape[0]), (0, OUT_PAD - w3.shape[1])))
    b3p = jnp.pad(b3, ((0, 0), (0, OUT_PAD - b3.shape[1])), constant_values=NEG_BIAS)
    return (
        w1.astype(jnp.bfloat16), b1.astype(jnp.float32),
        w2p.astype(jnp.bfloat16), b2p.astype(jnp.float32),
        w3p.astype(jnp.bfloat16), b3p.astype(jnp.float32),
    )


@functools.partial(jax.jit, static_argnames=("tb",))
def network_forward(x, prepared_params, tb=2048):
    """x: (B, 784) float32  ->  (B, 10) float32 log-probabilities.

    `prepared_params` must come from prepare_params().  `tb` is the batch tile
    (sweep toward 4096 on v5e/v6e with a larger vmem_limit if desired).
    """
    w1, b1, w2, b2, w3, b3 = prepared_params
    B = x.shape[0]

    # Batch tile: multiple of 16 rows (bf16 sublane packing).  Cap it so the
    # grid keeps >= 2 steps when the batch allows it (v7x megacore sharding).
    # Ragged tails are handled by masked partial blocks — no pad copy of x.
    TB = _round_up(max(16, min(tb, _round_up(pl.cdiv(B, 2), 16))), 16)
    grid = (pl.cdiv(B, TB),)

    def resident(a):  # weights/biases: full block, constant index_map (VMEM-resident)
        return pl.BlockSpec(a.shape, lambda i: (0,) * a.ndim)

    out = pl.pallas_call(
        mlp_kernel,
        out_shape=jax.ShapeDtypeStruct((B, OUT_PAD), jnp.bfloat16),
        grid=grid,
        in_specs=[
            pl.BlockSpec((TB, IN_F), lambda i: (i, 0)),   # f32 x tile streams
            resident(w1), resident(b1),
            resident(w2), resident(b2),
            resident(w3), resident(b3),
        ],
        out_specs=pl.BlockSpec((TB, OUT_PAD), lambda i: (i, 0)),
        compiler_params=pltpu.CompilerParams(
            dimension_semantics=("parallel",),        # megacore-shard the batch axis
            vmem_limit_bytes=48 * 1024 * 1024,        # safe within v7x's 64 MiB VMEM
        ),
    )(x, w1, b1, w2, b2, w3, b3)

    # Real logits live in columns 0..9; OOB/pad rows were never written back.
    return out[:B, :OUT_RAW].astype(jnp.float32)


def init_params(key):
    """Deterministic init matching torch.nn.Linear shapes.

    Weights are returned transposed to (in, out) for the x @ W convention.
    """
    ks = jax.random.split(key, 6)

    def linear(kw, kb, fan_in, fan_out):
        bound = 1.0 / jnp.sqrt(fan_in)
        w = jax.random.uniform(kw, (fan_in, fan_out), jnp.float32, -bound, bound)
        b = jax.random.uniform(kb, (1, fan_out), jnp.float32, -bound, bound)
        return w, b

    w1, b1 = linear(ks[0], ks[1], IN_F, H1)
    w2, b2 = linear(ks[2], ks[3], H1, H2_RAW)
    w3, b3 = linear(ks[4], ks[5], H2_RAW, OUT_RAW)
    return (w1, b1, w2, b2, w3, b3)


def reference_forward(x, raw_params):
    """Pure-JAX reference with the same bf16-input / f32-accumulate scheme and
    the same bf16 output rounding as the kernel."""
    w1, b1, w2, b2, w3, b3 = raw_params

    def dot(a, w):
        return jnp.dot(a.astype(jnp.bfloat16), w.astype(jnp.bfloat16),
                       preferred_element_type=jnp.float32)

    h1 = jnp.maximum(dot(x, w1) + b1, 0.0)
    h2 = jnp.maximum(dot(h1, w2) + b2, 0.0)
    logits = dot(h2, w3) + b3
    lp = jax.nn.log_softmax(logits, axis=1)
    return lp.astype(jnp.bfloat16).astype(jnp.float32)


if __name__ == "__main__":
    key = jax.random.PRNGKey(0)
    k_x, k_p = jax.random.split(key)
    raw_params = init_params(k_p)
    params = prepare_params(raw_params)   # one-time pad + bf16 cast

    # Case 1: small batch, single (partial) grid step.
    B = 8
    x = jax.random.uniform(k_x, (B, IN_F), jnp.float32)
    out = jax.block_until_ready(network_forward(x, params))
    ref = reference_forward(x, raw_params)
    assert out.shape == (B, OUT_RAW)
    assert jnp.allclose(out, ref, atol=2e-2, rtol=2e-2), "mismatch vs JAX reference"
    assert jnp.allclose(jnp.sum(jnp.exp(out), axis=1), 1.0, atol=2e-2)

    # Case 2: ragged batch exercising grid > 1 plus a masked partial tail block
    # (B=40, TB=16 -> grid=3, last block has 8 valid rows).
    B2 = 40
    x2 = jax.random.uniform(k_x, (B2, IN_F), jnp.float32)
    out2 = jax.block_until_ready(network_forward(x2, params, tb=16))
    ref2 = reference_forward(x2, raw_params)
    assert out2.shape == (B2, OUT_RAW)
    assert jnp.allclose(out2, ref2, atol=2e-2, rtol=2e-2), "mismatch (gridded path)"
    assert jnp.allclose(jnp.sum(jnp.exp(out2), axis=1), 1.0, atol=2e-2)

    print("KERNEL_OK")
</pallas_src>

<mosaic_0001>
module attributes {stable_mosaic.version = 11 : i64} {
  func.func @mlp_kernel(%arg0: i32, %arg1: memref<16x784xf32, #tpu.memory_space<vmem>>, %arg2: memref<784x128xbf16, #tpu.memory_space<vmem>>, %arg3: memref<1x128xf32, #tpu.memory_space<vmem>>, %arg4: memref<128x128xbf16, #tpu.memory_space<vmem>>, %arg5: memref<1x128xf32, #tpu.memory_space<vmem>>, %arg6: memref<128x128xbf16, #tpu.memory_space<vmem>>, %arg7: memref<1x128xf32, #tpu.memory_space<vmem>>, %arg8: memref<16x128xbf16, #tpu.memory_space<vmem>>) attributes {dimension_semantics = [#tpu.dimension_semantics<parallel>], iteration_bounds = array<i64: 1>, scalar_prefetch = 0 : i64, scratch_operands = 0 : i64, tpu.core_type = #tpu.core_type<tc>, window_params = [{transform_indices = @transform_0, window_bounds = array<i64: 16, 784>}, {pipeline_mode = #tpu.pipeline_mode<synchronous>, transform_indices = @transform_1, window_bounds = array<i64: 784, 128>}, {pipeline_mode = #tpu.pipeline_mode<synchronous>, transform_indices = @transform_2, window_bounds = array<i64: 1, 128>}, {pipeline_mode = #tpu.pipeline_mode<synchronous>, transform_indices = @transform_3, window_bounds = array<i64: 128, 128>}, {pipeline_mode = #tpu.pipeline_mode<synchronous>, transform_indices = @transform_4, window_bounds = array<i64: 1, 128>}, {pipeline_mode = #tpu.pipeline_mode<synchronous>, transform_indices = @transform_5, window_bounds = array<i64: 128, 128>}, {pipeline_mode = #tpu.pipeline_mode<synchronous>, transform_indices = @transform_6, window_bounds = array<i64: 1, 128>}, {transform_indices = @transform_7, window_bounds = array<i64: 16, 128>}]} {
    %c0 = arith.constant 0 : index
    %c0_0 = arith.constant 0 : index
    %0 = vector.load %arg1[%c0, %c0_0] : memref<16x784xf32, #tpu.memory_space<vmem>>, vector<16x784xf32>
    %1 = arith.truncf %0 : vector<16x784xf32> to vector<16x784xbf16>
    %c0_1 = arith.constant 0 : index
    %c0_2 = arith.constant 0 : index
    %2 = vector.load %arg2[%c0_1, %c0_2] : memref<784x128xbf16, #tpu.memory_space<vmem>>, vector<784x128xbf16>
    %cst = arith.constant dense<0.000000e+00> : vector<16x128xf32>
    %3 = tpu.matmul %1, %2, %cst {dimension_numbers = #tpu.dot_dimension_numbers<[1], [0], [0], [1], [0, 0, 1, 1], [], []>} : vector<16x784xbf16>, vector<784x128xbf16>, vector<16x128xf32> -> vector<16x128xf32>
    %c0_3 = arith.constant 0 : index
    %c0_4 = arith.constant 0 : index
    %4 = vector.load %arg3[%c0_3, %c0_4] : memref<1x128xf32, #tpu.memory_space<vmem>>, vector<1x128xf32>
    %5 = vector.broadcast %4 : vector<1x128xf32> to vector<16x128xf32>
    %6 = arith.addf %3, %5 : vector<16x128xf32>
    %cst_5 = arith.constant 0.000000e+00 : f32
    %7 = vector.broadcast %cst_5 : f32 to vector<16x128xf32>
    %8 = arith.maximumf %6, %7 : vector<16x128xf32>
    %9 = arith.truncf %8 : vector<16x128xf32> to vector<16x128xbf16>
    %c0_6 = arith.constant 0 : index
    %c0_7 = arith.constant 0 : index
    %10 = vector.load %arg4[%c0_6, %c0_7] : memref<128x128xbf16, #tpu.memory_space<vmem>>, vector<128x128xbf16>
    %cst_8 = arith.constant dense<0.000000e+00> : vector<16x128xf32>
    %11 = tpu.matmul %9, %10, %cst_8 {dimension_numbers = #tpu.dot_dimension_numbers<[1], [0], [0], [1], [0, 0, 1, 1], [], []>} : vector<16x128xbf16>, vector<128x128xbf16>, vector<16x128xf32> -> vector<16x128xf32>
    %c0_9 = arith.constant 0 : index
    %c0_10 = arith.constant 0 : index
    %12 = vector.load %arg5[%c0_9, %c0_10] : memref<1x128xf32, #tpu.memory_space<vmem>>, vector<1x128xf32>
    %13 = vector.broadcast %12 : vector<1x128xf32> to vector<16x128xf32>
    %14 = arith.addf %11, %13 : vector<16x128xf32>
    %cst_11 = arith.constant 0.000000e+00 : f32
    %15 = vector.broadcast %cst_11 : f32 to vector<16x128xf32>
    %16 = arith.maximumf %14, %15 : vector<16x128xf32>
    %17 = arith.truncf %16 : vector<16x128xf32> to vector<16x128xbf16>
    %c0_12 = arith.constant 0 : index
    %c0_13 = arith.constant 0 : index
    %18 = vector.load %arg6[%c0_12, %c0_13] : memref<128x128xbf16, #tpu.memory_space<vmem>>, vector<128x128xbf16>
    %cst_14 = arith.constant dense<0.000000e+00> : vector<16x128xf32>
    %19 = tpu.matmul %17, %18, %cst_14 {dimension_numbers = #tpu.dot_dimension_numbers<[1], [0], [0], [1], [0, 0, 1, 1], [], []>} : vector<16x128xbf16>, vector<128x128xbf16>, vector<16x128xf32> -> vector<16x128xf32>
    %c0_15 = arith.constant 0 : index
    %c0_16 = arith.constant 0 : index
    %20 = vector.load %arg7[%c0_15, %c0_16] : memref<1x128xf32, #tpu.memory_space<vmem>>, vector<1x128xf32>
    %21 = vector.broadcast %20 : vector<1x128xf32> to vector<16x128xf32>
    %22 = arith.addf %19, %21 : vector<16x128xf32>
    %cst_17 = arith.constant dense<0xFF800000> : vector<16xf32>
    %23 = vector.multi_reduction <maximumf>, %22, %cst_17 [1] : vector<16x128xf32> to vector<16xf32>
    %24 = vector.shape_cast %23 : vector<16xf32> to vector<16x1xf32>
    %25 = vector.broadcast %24 : vector<16x1xf32> to vector<16x128xf32>
    %26 = arith.subf %22, %25 : vector<16x128xf32>
    %27 = math.exp %26 : vector<16x128xf32>
    %cst_18 = arith.constant 1.000000e+00 : f32
    %28 = vector.broadcast %cst_18 : f32 to vector<128x1xf32>
    %cst_19 = arith.constant dense<0.000000e+00> : vector<16x1xf32>
    %29 = tpu.matmul %27, %28, %cst_19 {dimension_numbers = #tpu.dot_dimension_numbers<[1], [0], [0], [1], [0, 0, 1, 1], [], []>} : vector<16x128xf32>, vector<128x1xf32>, vector<16x1xf32> -> vector<16x1xf32>
    %30 = math.log %29 : vector<16x1xf32>
    %31 = vector.broadcast %30 : vector<16x1xf32> to vector<16x128xf32>
    %32 = arith.subf %26, %31 : vector<16x128xf32>
    %33 = arith.truncf %32 : vector<16x128xf32> to vector<16x128xbf16>
    %c0_20 = arith.constant 0 : index
    %c0_21 = arith.constant 0 : index
    %34 = vector.load %arg8[%c0_20, %c0_21] : memref<16x128xbf16, #tpu.memory_space<vmem>>, vector<16x128xbf16>
    tpu.vector_store %arg8[%c0_20, %c0_21], %33 {strides = array<i32>} : memref<16x128xbf16, #tpu.memory_space<vmem>>, vector<16x128xbf16>,
    return
  }
  func.func @transform_0(%arg0: i32) -> (i32, i32) {
    %c0_i32 = arith.constant 0 : i32
    %c0_i32_0 = arith.constant 0 : i32
    return %arg0, %c0_i32 : i32, i32
  }
  func.func @transform_1(%arg0: i32) -> (i32, i32) {
    %c0_i32 = arith.constant 0 : i32
    %c0_i32_0 = arith.constant 0 : i32
    %c0_i32_1 = arith.constant 0 : i32
    return %c0_i32, %c0_i32_0 : i32, i32
  }
  func.func @transform_2(%arg0: i32) -> (i32, i32) {
    %c0_i32 = arith.constant 0 : i32
    %c0_i32_0 = arith.constant 0 : i32
    %c0_i32_1 = arith.constant 0 : i32
    return %c0_i32, %c0_i32_0 : i32, i32
  }
  func.func @transform_3(%arg0: i32) -> (i32, i32) {
    %c0_i32 = arith.constant 0 : i32
    %c0_i32_0 = arith.constant 0 : i32
    %c0_i32_1 = arith.constant 0 : i32
    return %c0_i32, %c0_i32_0 : i32, i32
  }
  func.func @transform_4(%arg0: i32) -> (i32, i32) {
    %c0_i32 = arith.constant 0 : i32
    %c0_i32_0 = arith.constant 0 : i32
    %c0_i32_1 = arith.constant 0 : i32
    return %c0_i32, %c0_i32_0 : i32, i32
  }
  func.func @transform_5(%arg0: i32) -> (i32, i32) {
    %c0_i32 = arith.constant 0 : i32
    %c0_i32_0 = arith.constant 0 : i32
    %c0_i32_1 = arith.constant 0 : i32
    return %c0_i32, %c0_i32_0 : i32, i32
  }
  func.func @transform_6(%arg0: i32) -> (i32, i32) {
    %c0_i32 = arith.constant 0 : i32
    %c0_i32_0 = arith.constant 0 : i32
    %c0_i32_1 = arith.constant 0 : i32
    return %c0_i32, %c0_i32_0 : i32, i32
  }
  func.func @transform_7(%arg0: i32) -> (i32, i32) {
    %c0_i32 = arith.constant 0 : i32
    %c0_i32_0 = arith.constant 0 : i32
    return %arg0, %c0_i32 : i32, i32
  }
}

</mosaic_0001>

<bundles_post_ra>
// kernel: network_forward.1
= control target key start
LH: loop header
LB: loop body
LE: loop exit
PB: predicated region body
PF: predicated region fallthrough
CT: control target
= control target key end

     0   :  { %12 = vsyncpa [#allocation3], 0  ;;  %s1599_s0 = inlined_call_operand.hbm [shape: f32[8,784], index: 0, kind: input, shape index: {}]   ;;  %s1600_s1 = inlined_call_operand.hbm [shape: bf16[784,128], index: 1, kind: input, shape index: {}]   ;;  %s1601_s2 = inlined_call_operand.vmem [shape: f32[1,128], index: 2, kind: input, shape index: {}]   ;;  %s1602_s3 = inlined_call_operand.hbm [shape: bf16[128,128], index: 3, kind: input, shape index: {}]   ;;  %s1603_s4 = inlined_call_operand.vmem [shape: f32[1,128], index: 4, kind: input, shape index: {}]   ;;  %s1604_s5 = inlined_call_operand.hbm [shape: bf16[128,128], index: 5, kind: input, shape index: {}]   ;;  %s1605_s6 = inlined_call_operand.vmem [shape: f32[1,128], index: 6, kind: input, shape index: {}]   ;;  %s1606_s7 = inlined_call_operand.vmem [shape: bf16[8,128], index: 7, kind: output, shape index: {}]  }
   0x1   :  { %13 = vsyncpa [#allocation5], 0 }
   0x2   :  { %14 = vsyncpa [#allocation8], 0 }
   0x3   :  { %19 = vsyncadd [#allocation3], 896  ;;  %s1491_s24 = smov [#allocation4]  }
   0x4   :  { %s32_s25 = sshll.u32 %s1491_s24, 4  ;;  %s33_s25 = int_to_ptr.vmem [resolvable:$true] %s32_s25 }
   0x5   :  { %s1413_s26 = scalar_lea.vmem %s33_s25, 6272  ;;  %p1418_p1 = scmp.lt.s32.totalorder %s33_s25, %s33_s25 }
   0x6   :  { %p1414_p0 = scmp.ne.s32.totalorder %s33_s25, %s1413_s26  ;;  %p1419_p2 = scmp.lt.s32.totalorder %s1413_s26, %s1413_s26 }
   0x8   :  { %p1420_p3 = por %p1419_p2, %p1418_p1 }
   0xa   :  { %p1421_p4 = pnand %p1420_p3, %p1414_p0 }
   0xc   :  { %1424 = shalt.err (!%p1421_p4)
}
   0xd   :  { %s1492_s27 = smov 64   ;;  %s1493_s28 = smov 4  }
   0xe   :  { %38 = dma.hbm_to_vmem [thread:$0]  %s1600_s1, 6272, %s33_s25, [#allocation5], %s1492_s27, %s1492_s27, %s1493_s28  }
   0xf   :  { %s1494_s8 = smov [#allocation2]  }
  0x10   :  { %s20_s9 = sshll.u32 %s1494_s8, 4  ;;  %s21_s9 = int_to_ptr.vmem [resolvable:$true] %s20_s9 }
  0x11   :  { %s1433_s10 = scalar_lea.vmem %s21_s9, 896  ;;  %s1437_s11 = scalar_lea.vmem %s21_s9, 1792 }
  0x12   :  { %p1434_p5 = scmp.ne.s32.totalorder %s21_s9, %s1433_s10  ;;  %p1438_p6 = scmp.lt.s32.totalorder %s21_s9, %s21_s9 }
  0x13   :  { %p1439_p7 = scmp.lt.s32.totalorder %s1437_s11, %s1433_s10 }
  0x15   :  { %p1440_p8 = por %p1439_p7, %p1438_p6 }
  0x17   :  { %p1441_p9 = pnand %p1440_p8, %p1434_p5 }
  0x19   :  { %1444 = shalt.err (!%p1441_p9)
}
  0x1a   :  { %s1495_s12 = smov 896   ;;  %s1496_s13 = smov 56  }
  0x1b   :  { %26 = dma.hbm_to_vmem [thread:$0]  %s1599_s0, 896, %s21_s9, [#allocation3], %s1495_s12, %s1495_s12, %s1496_s13  }
  0x1c   :  { %s1497_s16 = smov [#allocation6]   ;;  %s1498_s1 = smov [#allocation7]  }
  0x1d   :  { %s46_s17 = sshll.u32 %s1497_s16, 4  ;;  %s60_s18 = sshll.u32 %s1498_s1, 4  ;;  %s47_s17 = int_to_ptr.vmem [resolvable:$true] %s46_s17  ;;  %s61_s18 = int_to_ptr.vmem [resolvable:$true] %s60_s18 }
  0x1e   :  { %s1453_s19 = scalar_lea.vmem %s47_s17, 1024  ;;  %p1458_p11 = scmp.lt.s32.totalorder %s47_s17, %s47_s17 }
  0x1f   :  { %p1454_p10 = scmp.ne.s32.totalorder %s47_s17, %s1453_s19  ;;  %p1459_p12 = scmp.lt.s32.totalorder %s1453_s19, %s1453_s19 }
  0x21   :  { %p1460_p13 = por %p1459_p12, %p1458_p11 }
  0x23   :  { %p1461_p0 = pnand %p1460_p13, %p1454_p10 }
  0x25   :  { %1464 = shalt.err (!%p1461_p0)
}
  0x26   :  { %52 = dma.hbm_to_vmem [thread:$0]  %s1602_s3, 1024, %s47_s17, [#allocation5], %s1492_s27, %s1492_s27, %s1493_s28  }
  0x27   :  { %s1473_s0 = scalar_lea.vmem %s61_s18, 1024  ;;  %p1478_p2 = scmp.lt.s32.totalorder %s61_s18, %s61_s18 }
  0x28   :  { %p1474_p1 = scmp.ne.s32.totalorder %s61_s18, %s1473_s0  ;;  %p1479_p3 = scmp.lt.s32.totalorder %s1473_s0, %s1473_s0 }
  0x2a   :  { %p1480_p4 = por %p1479_p3, %p1478_p2 }
  0x2c   :  { %p1481_p5 = pnand %p1480_p4, %p1474_p1 }
  0x2e   :  { %1484 = shalt.err (!%p1481_p5)
}
  0x2f   :  { %66 = dma.hbm_to_vmem [thread:$0]  %s1604_s5, 1024, %s61_s18, [#allocation8], %s1492_s27, %s1492_s27, %s1493_s28  }
  0x30   :  { %1485 = dma.done.wait [#allocation3], 1792  }
  0x31   :  { %1486 = vsyncadd [#allocation3], 4294965504 }
  0x32   :  { %1487 = dma.done.wait [#allocation5], 7296  }
  0x33   :  { %1488 = vsyncadd [#allocation5], 4294960000 }
  0x34   :  { %1489 = dma.done.wait [#allocation8], 1024  }
  0x35   :  { %1490 = vsyncadd [#allocation8], 4294966272  ;;  %v1332_v0 = vld [vmem:[#allocation4 + $0x78] sm:$0xff]   ;;  %v1336_v4 = vld [vmem:[#allocation4 + $0x70] sm:$0xff]   ;;  %v1499_v43 = vmov 0.0   ;;  %vm1500_vm0 = vmmov 0  }
  0x36   :  { %v1333_v1 = vld [vmem:[#allocation4 + $0x38] sm:$0xff]   ;;  %1133 = vmatprep.subr.bf16.mxu0 %v1332_v0  ;;  %v1337_v5 = vld [vmem:[#allocation4 + $0x30] sm:$0xff]   ;;  %v1340_v8 = vld [vmem:[#allocation4 + $0x68] sm:$0xff]   ;;  %vm502_vm1 = vcmask 130048  }
  0x37   :  { %v1334_v2 = vld [vmem:[#allocation4 + $0xf8] sm:$0xff]   ;;  %1134 = vmatpush3.bf16.msra.mxu0 %v1333_v1  ;;  %v1338_v6 = vld [vmem:[#allocation4 + $0xf0] sm:$0xff]   ;;  %v1341_v9 = vld [vmem:[#allocation4 + $0x28] sm:$0xff]  }
  0x38   :  { %v1335_v3 = vld [vmem:[#allocation4 + $0xb8] sm:$0xff]   ;;  %1155 = vmatprep.subr.bf16.mxu1 %v1334_v2  ;;  %1135 = vmatprep.subr.bf16.mxu0 %v1336_v4  ;;  %v1339_v7 = vld [vmem:[#allocation4 + $0xb0] sm:$0xff]   ;;  %v1342_v10 = vld [vmem:[#allocation4 + $0xe8] sm:$0xff]  }
  0x39   :  { %1156 = vmatpush3.bf16.msra.mxu1 %v1335_v3  ;;  %v1343_v11 = vld [vmem:[#allocation4 + $0xa8] sm:$0xff]   ;;  %v1344_v12 = vld [vmem:[#allocation4 + $0x60] sm:$0xff]   ;;  %v1348_v16 = vld [vmem:[#allocation4 + $0x58] sm:$0xff]  }
  0x3a   :  { %1157 = vmatprep.subr.bf16.mxu1 %v1338_v6  ;;  %v1345_v13 = vld [vmem:[#allocation4 + $0x20] sm:$0xff]   ;;  %v1349_v17 = vld [vmem:[#allocation4 + $0x18] sm:$0xff]   ;;  %v1352_v20 = vld [vmem:[#allocation4 + $0x50] sm:$0xff]  }
  0x3b   :  { %1136 = vmatpush3.bf16.msra.mxu0 %v1337_v5  ;;  %v1346_v14 = vld [vmem:[#allocation4 + $0xe0] sm:$0xff]   ;;  %v1350_v18 = vld [vmem:[#allocation4 + $0xd8] sm:$0xff]   ;;  %v1353_v21 = vld [vmem:[#allocation4 + $0x10] sm:$0xff]  }
  0x3c   :  { %1137 = vmatprep.subr.bf16.mxu0 %v1340_v8  ;;  %v1347_v15 = vld [vmem:[#allocation4 + $0xa0] sm:$0xff]   ;;  %v1351_v19 = vld [vmem:[#allocation4 + $0x98] sm:$0xff]   ;;  %v1354_v22 = vld [vmem:[#allocation4 + $0xd0] sm:$0xff]  }
  0x3d   :  { %1158 = vmatpush3.bf16.msra.mxu1 %v1339_v7  ;;  %v1355_v23 = vld [vmem:[#allocation4 + $0x90] sm:$0xff]   ;;  %v1356_v24 = vld [vmem:[#allocation4 + $0x48] sm:$0xff]   ;;  %v1360_v28 = vld [vmem:[#allocation4 + $0x40] sm:$0xff]  }
  0x3e   :  { %1159 = vmatprep.subr.bf16.mxu1 %v1342_v10  ;;  %v1357_v25 = vld [vmem:[#allocation4 + $0x8] sm:$0xff]   ;;  %v1361_v29 = vld [vmem:[#allocation4] sm:$0xff]   ;;  %v83_v31 = vld [vmem:[#allocation2 + $0x8] sm:$0xff] }
  0x3f   :  { %1138 = vmatpush3.bf16.msra.mxu0 %v1341_v9  ;;  %v1358_v26 = vld [vmem:[#allocation4 + $0xc8] sm:$0xff]   ;;  %v1362_v30 = vld [vmem:[#allocation4 + $0xc0] sm:$0xff]   ;;  %v90_v32 = vld [vmem:[#allocation2 + $0x40] sm:$0xff] }
  0x40   :  { %1139 = vmatprep.subr.bf16.mxu0 %v1344_v12  ;;  %v1359_v27 = vld [vmem:[#allocation4 + $0x88] sm:$0xff]   ;;  %v97_v33 = vpack.c.bf16 %v90_v32, %v83_v31  ;;  %v1363_v34 = vld [vmem:[#allocation4 + $0x80] sm:$0xff]   ;;  %v82_v35 = vld [vmem:[#allocation2] sm:$0xff] }
  0x41   :  { %1160 = vmatpush3.bf16.msra.mxu1 %v1343_v11  ;;  %v89_v36 = vld [vmem:[#allocation2 + $0x38] sm:$0xff]  ;;  %v1364_v38 = vld [vmem:[#allocation4 + $0x178] sm:$0xff]   ;;  %v92_v40 = vld [vmem:[#allocation2 + $0x50] sm:$0xff] }
  0x42   :  { %1161 = vmatprep.subr.bf16.mxu1 %v1346_v14  ;;  %538 = vmatprep.mubr.bf16.mxu0 %v97_v33  ;;  %v96_v37 = vpack.c.bf16 %v89_v36, %v82_v35  ;;  %v85_v39 = vld [vmem:[#allocation2 + $0x18] sm:$0xff]  ;;  %v1365_v42 = vld [vmem:[#allocation4 + $0x138] sm:$0xff]   ;;  %v84_v44 = vld [vmem:[#allocation2 + $0x10] sm:$0xff] }
  0x43   :  { %1140 = vmatpush3.bf16.msra.mxu0 %v1345_v13  ;;  %v99_v41 = vpack.c.bf16 %v92_v40, %v85_v39  ;;  %v91_v45 = vld [vmem:[#allocation2 + $0x48] sm:$0xff]  ;;  %v1366_v47 = vld [vmem:[#allocation4 + $0x170] sm:$0xff]   ;;  %v1368_v49 = vld [vmem:[#allocation4 + $0x168] sm:$0xff]  }
  0x44   :  { %1141 = vmatprep.subr.bf16.mxu0 %v1348_v16  ;;  %v98_v46 = vpack.c.bf16 %v91_v45, %v84_v44  ;;  %v1367_v48 = vld [vmem:[#allocation4 + $0x130] sm:$0xff]   ;;  %v1369_v50 = vld [vmem:[#allocation4 + $0x128] sm:$0xff]   ;;  %v1370_v51 = vld [vmem:[#allocation4 + $0x160] sm:$0xff]  }
  0x45   :  { %1162 = vmatpush3.bf16.msra.mxu1 %v1347_v15  ;;  %579 = vmatprep.mubr.bf16.mxu1 %v99_v41  ;;  %v1371_v52 = vld [vmem:[#allocation4 + $0x120] sm:$0xff]   ;;  %v1372_v53 = vld [vmem:[#allocation4 + $0x158] sm:$0xff]   ;;  %v1374_v55 = vld [vmem:[#allocation4 + $0x150] sm:$0xff]  }
  0x46   :  { %1163 = vmatprep.subr.bf16.mxu1 %v1350_v18  ;;  %v1373_v54 = vld [vmem:[#allocation4 + $0x118] sm:$0xff]   ;;  %v1380_v56 = vld [vmem:[#allocation4 + $0x180] sm:$0xff]   ;;  %v1375_v58 = vld [vmem:[#allocation4 + $0x110] sm:$0xff]  }
  0x47   :  { %1142 = vmatpush3.bf16.msra.mxu0 %v1349_v17  ;;  %v87_v57 = vld [vmem:[#allocation2 + $0x28] sm:$0xff]  ;;  %v1376_v59 = vld [vmem:[#allocation4 + $0x148] sm:$0xff]   ;;  %v94_v60 = vld [vmem:[#allocation2 + $0x60] sm:$0xff] }
  0x48   :  { %1143 = vmatprep.subr.bf16.mxu0 %v1352_v20  ;;  %v101_v61 = vpack.c.bf16 %v94_v60, %v87_v57  ;;  %v88_v62 = vld [vmem:[#allocation2 + $0x30] sm:$0xff]  ;;  %v95_v63 = vld [vmem:[#allocation2 + $0x68] sm:$0xff]  ;;  %v1377_v1 = vld [vmem:[#allocation4 + $0x108] sm:$0xff]  }
  0x49   :  { %1164 = vmatpush3.bf16.msra.mxu1 %v1351_v19  ;;  %v102_v0 = vpack.c.bf16 %v95_v63, %v88_v62  ;;  %v1378_v2 = vld [vmem:[#allocation4 + $0x140] sm:$0xff]   ;;  %v86_v4 = vld [vmem:[#allocation2 + $0x20] sm:$0xff]  ;;  %v93_v5 = vld [vmem:[#allocation2 + $0x58] sm:$0xff] }
  0x4a   :  { %1165 = vmatprep.subr.bf16.mxu1 %v1354_v22  ;;  %v1379_v3 = vld [vmem:[#allocation4 + $0x100] sm:$0xff]   ;;  %v100_v6 = vpack.c.bf16 %v93_v5, %v86_v4  ;;  %v1382_v8 = vld [vmem:[#allocation6 + $0x30] sm:$0xff]   ;;  %v1383_v9 = vld [vmem:[#allocation6 + $0x28] sm:$0xff]   ;;  %v1501_v4 = vmov 1.0  }
  0x4b   :  { %1144 = vmatpush3.bf16.msra.mxu0 %v1353_v21  ;;  %v1381_v7 = vld [vmem:[#allocation6 + $0x38] sm:$0xff]   ;;  %v1384_v10 = vld [vmem:[#allocation6 + $0x20] sm:$0xff]   ;;  %v1386_v12 = vld [vmem:[#allocation6 + $0x10] sm:$0xff]  }
  0x4c   :  { %1145 = vmatprep.subr.bf16.mxu0 %v1356_v24  ;;  %v1385_v11 = vld [vmem:[#allocation6 + $0x18] sm:$0xff]   ;;  %v1387_v13 = vld [vmem:[#allocation6 + $0x8] sm:$0xff]   ;;  %v1388_v14 = vld [vmem:[#allocation6] sm:$0xff]  }
  0x4d   :  { %1166 = vmatpush3.bf16.msra.mxu1 %v1355_v23  ;;  %v1389_v15 = vld [vmem:[#allocation7 + $0x38] sm:$0xff]   ;;  %v1390_v16 = vld [vmem:[#allocation7 + $0x30] sm:$0xff]   ;;  %v1391_v17 = vld [vmem:[#allocation7 + $0x28] sm:$0xff]  }
  0x4e   :  { %1167 = vmatprep.subr.bf16.mxu1 %v1358_v26  ;;  %v1392_v18 = vld [vmem:[#allocation7 + $0x20] sm:$0xff]   ;;  %v1393_v19 = vld [vmem:[#allocation7 + $0x18] sm:$0xff]   ;;  %v1055_v32 = vld [vmem:[%s1601_s2] ss:$0 sm:$0xff] }
  0x4f   :  { %1146 = vmatpush3.bf16.msra.mxu0 %v1357_v25  ;;  %v1396_v57 = vld [vmem:[#allocation7] sm:$0xff]  }
  0x50   :  { %1147 = vmatprep.subr.bf16.mxu0 %v1360_v28 }
  0x51   :  { %1168 = vmatpush3.bf16.msra.mxu1 %v1359_v27 }
  0x52   :  { %1169 = vmatprep.subr.bf16.mxu1 %v1362_v30 }
  0x53   :  { %1148 = vmatpush3.bf16.msra.mxu0 %v1361_v29 }
  0x54   :  { %1177 = vmatprep.subr.bf16.mxu0 %v1364_v38 }
  0x55   :  { %1170 = vmatpush3.bf16.msra.mxu1 %v1363_v34 }
  0x56   :  { %1237 = vmatprep.subr.bf16.mxu1 %v1499_v43  ;;  %539 = vmatmul.mubr.bf16.vlgmr.msra.gmra.mxu0 %v96_v37 }
  0x57   :  { %1178 = vmatpush3.bf16.msra.mxu0 %v1365_v42  ;;  %620 = vmatprep.mubr.bf16.mxu0 %v101_v61 }
  0x58   :  { %580 = vmatmul.mubr.bf16.vlgmr.msra.gmra.mxu1 %v98_v46  ;;  %1179 = vmatprep.subr.bf16.mxu0 %v1366_v47 }
  0x59   :  { %1239 = vmatprep.mubr.msk.bf16.mxu1 %vm1500_vm0, %v1499_v43  ;;  %1238 = vmatpush3.bf16.msra.mxu1 %v1380_v56  ;;  %v1395_v56 = vld [vmem:[#allocation7 + $0x8] sm:$0xff]  }
  0x5a   :  { %1243 = vmatprep.subr.bf16.mxu1 %v1499_v43 }
  0x5b   :  { %1180 = vmatpush3.bf16.msra.mxu0 %v1367_v48 }
  0x5c   :  { %1181 = vmatprep.subr.bf16.mxu0 %v1368_v49 }
  0x5f   :  { %1182 = vmatpush3.bf16.msra.mxu0 %v1369_v50 }
  0x60   :  { %1183 = vmatprep.subr.bf16.mxu0 %v1370_v51  ;;  %1240 = vmatmul.mubr.msk.bf16.vlgmr.msra.gmra.mxu1 %vm502_vm1, %v102_v0 }
  0x61   :  { %1259 = vmatprep.mubr.msk.bf16.mxu1 %vm1500_vm0, %v1499_v43  ;;  %1244 = vmatpush3.bf16.msra.mxu1 %v1381_v7 }
  0x62   :  { %1245 = vmatprep.subr.bf16.mxu1 %v1499_v43 }
  0x63   :  { %1184 = vmatpush3.bf16.msra.mxu0 %v1371_v52 }
  0x64   :  { %1185 = vmatprep.subr.bf16.mxu0 %v1372_v53 }
  0x65   :  { %1246 = vmatpush3.bf16.msra.mxu1 %v1382_v8 }
  0x66   :  { %1247 = vmatprep.subr.bf16.mxu1 %v1499_v43 }
  0x67   :  { %1186 = vmatpush3.bf16.msra.mxu0 %v1373_v54 }
  0x68   :  { %1187 = vmatprep.subr.bf16.mxu0 %v1374_v55  ;;  %v1394_v55 = vld [vmem:[#allocation7 + $0x10] sm:$0xff]  }
  0x69   :  { %1248 = vmatpush3.bf16.msra.mxu1 %v1383_v9 }
  0x6a   :  { %1249 = vmatprep.subr.bf16.mxu1 %v1499_v43 }
  0x6b   :  { %1188 = vmatpush3.bf16.msra.mxu0 %v1375_v58  ;;  %v1106_v58 = vld [vmem:[%s1603_s4] ss:$0 sm:$0xff] }
  0x6c   :  { %1189 = vmatprep.subr.bf16.mxu0 %v1376_v59 }
  0x6d   :  { %1250 = vmatpush3.bf16.msra.mxu1 %v1384_v10 }
  0x6e   :  { %1251 = vmatprep.subr.bf16.mxu1 %v1499_v43 }
  0x6f   :  { %1190 = vmatpush3.bf16.msra.mxu0 %v1377_v1 }
  0x70   :  { %1191 = vmatprep.subr.bf16.mxu0 %v1378_v2 }
  0x71   :  { %1252 = vmatpush3.bf16.msra.mxu1 %v1385_v11 }
  0x72   :  { %1253 = vmatprep.subr.bf16.mxu1 %v1499_v43 }
  0x73   :  { %1192 = vmatpush3.bf16.msra.mxu0 %v1379_v3 }
  0x74   :  { %1263 = vmatprep.subr.bf16.mxu0 %v1499_v43 }
  0x75   :  { %1254 = vmatpush3.bf16.msra.mxu1 %v1386_v12 }
  0x76   :  { %621 = vmatmul.mubr.bf16.vlgmr.msra.gmra.mxu0 %v100_v6  ;;  %1255 = vmatprep.subr.bf16.mxu1 %v1499_v43 }
  0x77   :  { %1279 = vmatprep.mubr.msk.bf16.mxu0 %vm1500_vm0, %v1499_v43  ;;  %1264 = vmatpush3.bf16.msra.mxu0 %v1389_v15 }
  0x78   :  { %1265 = vmatprep.subr.bf16.mxu0 %v1499_v43 }
  0x79   :  { %1256 = vmatpush3.bf16.msra.mxu1 %v1387_v13 }
  0x7a   :  { %1257 = vmatprep.subr.bf16.mxu1 %v1499_v43 }
  0x7b   :  { %1266 = vmatpush3.bf16.msra.mxu0 %v1390_v16 }
  0x7c   :  { %1267 = vmatprep.subr.bf16.mxu0 %v1499_v43 }
  0x7d   :  { %1258 = vmatpush3.bf16.msra.mxu1 %v1388_v14 }
  0x7e   :  { %1283 = vmatprep.subr.mxu1 %v1501_v4 }
  0x7f   :  { %1268 = vmatpush3.bf16.msra.mxu0 %v1391_v17 }
  0x80   :  { %1269 = vmatprep.subr.bf16.mxu0 %v1499_v43 }
  0x83   :  { %1270 = vmatpush3.bf16.msra.mxu0 %v1392_v18 }
  0x84   :  { %1271 = vmatprep.subr.bf16.mxu0 %v1499_v43 }
  0x87   :  { %1272 = vmatpush3.bf16.msra.mxu0 %v1393_v19  ;;  %v1502_v19 = vmov 0  }
  0x88   :  { %1273 = vmatprep.subr.bf16.mxu0 %v1499_v43  ;;  %1330 = vset.pattern.permute.xlu1 %v1502_v19 }
  0x89   :  { %1331 = vset.pattern.permute.xlu0 %v1502_v19 }
  0x8b   :  { %1274 = vmatpush3.bf16.msra.mxu0 %v1394_v55 }
  0x8c   :  { %1275 = vmatprep.subr.bf16.mxu0 %v1499_v43 }
  0x8f   :  { %1276 = vmatpush3.bf16.msra.mxu0 %v1395_v56 }
  0x90   :  { %1277 = vmatprep.subr.bf16.mxu0 %v1499_v43  ;;  %v1115_v43 = vld [vmem:[%s1605_s6] ss:$0 sm:$0xff] }
  0x93   :  { %1278 = vmatpush3.bf16.msra.mxu0 %v1396_v57 }
 0x116   :  { %v1149_v23 = vpop.f32.mrf.mxu0 }
 0x118   :  { %v1171_v20 = vpop.f32.mrf.mxu1  ;;  %v1150_v25 = vpop.f32.mrf.mxu0 }
 0x119   :  { %v1151_v31 = vadd.f32 %v1150_v25, %v1149_v23 }
 0x11a   :  { %v1172_v21 = vpop.f32.mrf.mxu1  ;;  %v1152_v28 = vpop.f32.mrf.mxu0 }
 0x11b   :  { %v541_v34 = vadd.f32 %v1151_v31, %v1055_v32  ;;  %v1173_v35 = vadd.f32 %v1172_v21, %v1171_v20 }
 0x11c   :  { %v1174_v22 = vpop.f32.mrf.mxu1  ;;  %v1153_v33 = vpop.f32.mrf.mxu0 }
 0x11d   :  { %v1154_v36 = vadd.f32 %v1153_v33, %v1152_v28  ;;  %v582_v39 = vadd.f32 %v1173_v35, %v541_v34 }
 0x11e   :  { %v1175_v24 = vpop.f32.mrf.mxu1 }
 0x11f   :  { %v544_v40 = vadd.f32 %v1154_v36, %v1055_v32  ;;  %v1176_v41 = vadd.f32 %v1175_v24, %v1174_v22 }
 0x120   :  { %v663_v26 = vpop.f32.mrf.mxu1 }
 0x121   :  { %v585_v47 = vadd.f32 %v1176_v41, %v544_v40 }
 0x122   :  { %v1241_v27 = vpop.f32.mrf.mxu1 }
 0x124   :  { %v666_v29 = vpop.f32.mrf.mxu1 }
 0x126   :  { %v1242_v30 = vpop.f32.mrf.mxu1 }
 0x136   :  { %v1193_v37 = vpop.f32.mrf.mxu0 }
 0x138   :  { %v1194_v38 = vpop.f32.mrf.mxu0 }
 0x139   :  { %v1195_v42 = vadd.f32 %v1194_v38, %v1193_v37 }
 0x13a   :  { %v1196_v44 = vpop.f32.mrf.mxu0 }
 0x13b   :  { %v623_v45 = vadd.f32 %v1195_v42, %v582_v39 }
 0x13c   :  { %v1197_v46 = vpop.f32.mrf.mxu0 }
 0x13d   :  { %v1198_v48 = vadd.f32 %v1197_v46, %v1196_v44  ;;  %v664_v49 = vadd.f32 %v663_v26, %v623_v45 }
 0x13f   :  { %v626_v50 = vadd.f32 %v1198_v48, %v585_v47  ;;  %v670_v52 = vmax.f32 %v664_v49, 0.0 }
 0x141   :  { %v667_v51 = vadd.f32 %v666_v29, %v626_v50 }
 0x143   :  { %v671_v53 = vmax.f32 %v667_v51, 0.0 }
 0x145   :  { %v672_v54 = vpack.c.bf16 %v671_v53, %v670_v52 }
 0x147   :  { %1260 = vmatmul.mubr.bf16.vlgmr.msra.gmra.mxu1 %v672_v54 }
 0x148   :  { %1284 = vmatpush3.msra.mxu1 %v1501_v4 }
 0x149   :  { %1285 = vmatprep.subr.mxu1 %v1501_v4 }
 0x14a   :  { %1286 = vmatpush3.msra.mxu1 %v1501_v4 }
 0x14b   :  { %1287 = vmatprep.subr.mxu1 %v1501_v4 }
 0x14c   :  { %1288 = vmatpush3.msra.mxu1 %v1501_v4 }
 0x14d   :  { %1289 = vmatprep.subr.mxu1 %v1501_v4 }
 0x14e   :  { %1290 = vmatpush3.msra.mxu1 %v1501_v4 }
 0x14f   :  { %1291 = vmatprep.subr.mxu1 %v1501_v4 }
 0x150   :  { %1292 = vmatpush3.msra.mxu1 %v1501_v4 }
 0x151   :  { %1293 = vmatprep.subr.mxu1 %v1501_v4 }
 0x152   :  { %1294 = vmatpush3.msra.mxu1 %v1501_v4 }
 0x153   :  { %1295 = vmatprep.subr.mxu1 %v1501_v4 }
 0x154   :  { %1296 = vmatpush3.msra.mxu1 %v1501_v4 }
 0x155   :  { %1297 = vmatprep.subr.mxu1 %v1501_v4 }
 0x156   :  { %1298 = vmatpush3.msra.mxu1 %v1501_v4 }
 0x157   :  { %1299 = vmatprep.subr.mxu1 %v1501_v4 }
 0x158   :  { %1300 = vmatpush3.msra.mxu1 %v1501_v4 }
 0x159   :  { %1301 = vmatprep.subr.mxu1 %v1501_v4 }
 0x15a   :  { %1302 = vmatpush3.msra.mxu1 %v1501_v4 }
 0x15b   :  { %1303 = vmatprep.subr.mxu1 %v1501_v4 }
 0x15c   :  { %1304 = vmatpush3.msra.mxu1 %v1501_v4 }
 0x15d   :  { %1305 = vmatprep.subr.mxu1 %v1501_v4 }
 0x15e   :  { %1306 = vmatpush3.msra.mxu1 %v1501_v4 }
 0x15f   :  { %1307 = vmatprep.subr.mxu1 %v1501_v4 }
 0x160   :  { %1308 = vmatpush3.msra.mxu1 %v1501_v4 }
 0x161   :  { %1309 = vmatprep.subr.mxu1 %v1501_v4 }
 0x162   :  { %1310 = vmatpush3.msra.mxu1 %v1501_v4 }
 0x163   :  { %1311 = vmatprep.subr.mxu1 %v1501_v4 }
 0x164   :  { %1312 = vmatpush3.msra.mxu1 %v1501_v4 }
 0x165   :  { %1313 = vmatprep.subr.mxu1 %v1501_v4 }
 0x166   :  { %1314 = vmatpush3.msra.mxu1 %v1501_v4 }
 0x207   :  { %v778_v59 = vpop.f32.mrf.mxu1 }
 0x208   :  { %v779_v61 = vadd.f32 %v1106_v58, %v778_v59 }
 0x209   :  { %v1261_v60 = vpop.f32.mrf.mxu1 }
 0x20a   :  { %v785_v1 = vmax.f32 %v779_v61, 0.0 }
 0x20b   :  { %v781_v62 = vpop.f32.mrf.mxu1 }
 0x20c   :  { %v782_v63 = vadd.f32 %v1106_v58, %v781_v62 }
 0x20d   :  { %v1262_v0 = vpop.f32.mrf.mxu1 }
 0x20e   :  { %v786_v2 = vmax.f32 %v782_v63, 0.0 }
 0x210   :  { %v787_v3 = vpack.c.bf16 %v786_v2, %v785_v1 }
 0x212   :  { %1280 = vmatmul.mubr.bf16.vlgmr.msra.gmra.mxu0 %v787_v3 }
 0x2d2   :  { %v893_v5 = vpop.f32.mrf.mxu0 }
 0x2d3   :  { %v894_v6 = vadd.f32 %v1115_v43, %v893_v5 }
 0x2d4   :  { %v1281_v7 = vpop.f32.mrf.mxu0 }
 0x2d5   :  { %900 = vmax.xlane.f32.xlu0 %v894_v6 }
 0x2d6   :  { %v896_v8 = vpop.f32.mrf.mxu0 }
 0x2d7   :  { %v897_v9 = vadd.f32 %v1115_v43, %v896_v8 }
 0x2d8   :  { %v1282_v10 = vpop.f32.mrf.mxu0 }
 0x2d9   :  { %902 = vmax.xlane.f32.xlu0 %v897_v9 }
 0x35e   :  { %v901_v11 = vpop.xlane.xlu0 %900 }
 0x35f   :  { %v904_v12 = vsub.f32 %v894_v6, %v901_v11 }
 0x361   :  { %v906_v13 = vmul.f32 1.442695, %v904_v12 }
 0x362   :  { %v903_v14 = vpop.xlane.xlu0 %902 }
 0x363   :  { %1397 = vpow2.f32 %v906_v13  ;;  %v905_v15 = vsub.f32 %v897_v9, %v903_v14 }
 0x365   :  { %v908_v16 = vmul.f32 1.442695, %v905_v15 }
 0x367   :  { %1399 = vpow2.f32 %v908_v16 }
 0x370   :  { %v1398_v17 = vpop.eup %1397 }
 0x371   :  { %1315 = vmatprep.mubr.f32.mxu1 %v1398_v17 }
 0x374   :  { %v1400_v18 = vpop.eup %1399 }
 0x375   :  { %1316 = vmatmul.mubr.f32.vlgmr.msra.gmra.mxu1 %v1400_v18 }
 0x435   :  { %v1317_v20 = vpop.f32.mrf.mxu1 }
 0x437   :  { %v976_v21 = vpop.f32.mrf.mxu1 }
 0x438   :  { %1401 = vlog2.f32 %v976_v21 }
 0x439   :  { %1403 = vlog2.f32 %v1317_v20 }
 0x445   :  { %v1402_v22 = vpop.eup %1401 }
 0x446   :  { %v986_v23 = vmul.f32 0.6931472, %v1402_v22  ;;  %v1404_v24 = vpop.eup %1403 }
 0x447   :  { %v988_v25 = vmul.f32 0.6931472, %v1404_v24 }
 0x448   :  { %991 = vperm.xlu1 %1330, %v986_v23  }
 0x44c   :  { %996 = vperm.xlu1 %1330, %v988_v25  }
 0x4c3   :  { %v992_v26 = vpop.permute.xlu1 %991 }
 0x4c4   :  { %v999_v28 = vsub.f32 %v904_v12, %v992_v26 }
 0x4c7   :  { %v997_v27 = vpop.permute.xlu1 %996 }
 0x4c8   :  { %v1000_v29 = vsub.f32 %v905_v15, %v997_v27 }
 0x4ca   :  { %v1131_v30 = vpack.c.bf16 %v1000_v29, %v999_v28 }
 0x4cc   :  { %1132 = vst [vmem:[#allocation9] sm:$0xff] %v1131_v30  }
 0x4d3   :  { %v1029_v31 = vld [vmem:[#allocation9] sm:$0xf] }
 0x4d4   :  { %1030 = vst [vmem:[%s1606_s7] sm:$0xf] %v1029_v31 }
 0x4d5   :  { %1048 = vsyncpa [#allocation3], 1 }
 0x4d6   :  { %1049 = vsyncpa [#allocation5], 1 }
 0x4d7   :  { %1050 = vsyncpa [#allocation8], 1 }

</bundles_post_ra>
